<compile_context>
chip_gen: v7x
topology: tpu7x:2x2x1
jax: 0.10.0
libtpu: 0.0.40
codegen_flags: <defaults>
</compile_context>

<pallas_src>
import jax
import jax.numpy as jnp
from jax.experimental import pallas as pl
from jax.experimental.pallas import tpu as pltpu


_BATCH_ALIGN = 16  # bf16 sublane packing: keep batch-tile rows a multiple of 16


def _round_up(v: int, m: int) -> int:
    return (v + m - 1) // m * m


def _select_batch_tiling(batch: int, block_b: int) -> tuple[int, int]:
    """Pick (batch_tile, padded_batch).

    Balanced tiles bound over-padding to a handful of rows (instead of up to
    ~block_b with round_up(B, block_b)), and force at least two grid steps
    whenever the batch is splittable so the "parallel" axis can occupy both
    v7x TensorCores.
    """
    b_aligned = _round_up(batch, _BATCH_ALIGN)
    n_tiles = max(
        pl.cdiv(b_aligned, block_b),
        2 if b_aligned >= 2 * _BATCH_ALIGN else 1,
    )
    tb = _round_up(pl.cdiv(b_aligned, n_tiles), _BATCH_ALIGN)
    b_pad = _round_up(b_aligned, tb)
    return tb, b_pad


def shallow_mlp_kernel(x_ref, w1_ref, b1_ref, w2_ref, b2_ref, o_ref):
    # First linear: (TB, in) @ (in, hid_pad), bf16 inputs, f32 accumulation.
    h = jnp.dot(x_ref[...], w1_ref[...], preferred_element_type=jnp.float32)
    # Bias + ReLU on the VPU (plenty of slack next to the MXU here).
    h = jnp.maximum(h + b1_ref[...], 0.0)
    # Second linear: (TB, hid_pad) @ (hid_pad, out), bf16 inputs, f32 accum.
    y = jnp.dot(h.astype(jnp.bfloat16), w2_ref[...],
                preferred_element_type=jnp.float32)
    o_ref[...] = (y + b2_ref[...]).astype(o_ref.dtype)


def shallow_mlp(x, w1, b1, w2, b2, *, block_b: int = 512):
    """x: (B, input_size); w1: (input_size, hidden); b1: (1, hidden);
    w2: (hidden, output); b2: (1, output). Returns (B, output) in f32."""
    B, in_size = x.shape
    hidden = w1.shape[1]
    out_size = w2.shape[1]

    # Hidden dim lane-padded (weights are grid-invariant, so this is a
    # one-time cost); output dim intentionally left unpadded.
    hid_pad = _round_up(hidden, 128)

    tb, b_pad = _select_batch_tiling(B, block_b)

    # Zero-pad; padded hidden columns / w2 rows are zero so they cannot
    # perturb valid outputs, and padded batch rows are sliced off below.
    x_p = x if b_pad == B else jnp.pad(x, ((0, b_pad - B), (0, 0)))
    w1_p = w1 if hid_pad == hidden else jnp.pad(w1, ((0, 0), (0, hid_pad - hidden)))
    b1_p = b1 if hid_pad == hidden else jnp.pad(b1, ((0, 0), (0, hid_pad - hidden)))
    w2_p = w2 if hid_pad == hidden else jnp.pad(w2, ((0, hid_pad - hidden), (0, 0)))

    # bf16 matmul operands (MXU-native on v5e/v6e/v7x), f32 biases + output.
    x_p = x_p.astype(jnp.bfloat16)
    w1_p = w1_p.astype(jnp.bfloat16)
    w2_p = w2_p.astype(jnp.bfloat16)
    b1_p = b1_p.astype(jnp.float32)
    b2_p = b2.astype(jnp.float32)

    flops = 2 * b_pad * (in_size * hid_pad + hid_pad * out_size)
    bytes_accessed = (
        2 * (b_pad * in_size + in_size * hid_pad + hid_pad * out_size)  # bf16
        + 4 * (hid_pad + out_size + b_pad * out_size)                   # f32
    )

    out = pl.pallas_call(
        shallow_mlp_kernel,
        out_shape=jax.ShapeDtypeStruct((b_pad, out_size), jnp.float32),
        grid_spec=pltpu.PrefetchScalarGridSpec(
            num_scalar_prefetch=0,
            grid=(b_pad // tb,),
            in_specs=[
                # Activations tiled along batch (double-buffered by Pallas).
                pl.BlockSpec((tb, in_size), lambda i: (i, 0)),
                # Weights / biases: fixed block -> VMEM-resident across steps.
                pl.BlockSpec((in_size, hid_pad), lambda i: (0, 0)),
                pl.BlockSpec((1, hid_pad), lambda i: (0, 0)),
                pl.BlockSpec((hid_pad, out_size), lambda i: (0, 0)),
                pl.BlockSpec((1, out_size), lambda i: (0, 0)),
            ],
            out_specs=pl.BlockSpec((tb, out_size), lambda i: (i, 0)),
        ),
        compiler_params=pltpu.CompilerParams(
            dimension_semantics=("parallel",),
        ),
        cost_estimate=pl.CostEstimate(
            flops=flops, transcendentals=0, bytes_accessed=bytes_accessed
        ),
    )(x_p, w1_p, b1_p, w2_p, b2_p)

    # Strip batch padding only (feature dim is already exact).
    return out if b_pad == B else out[:B]


def init_params(key, input_size, hidden_size, output_size):
    """Deterministic init mimicking nn.Linear's uniform(-1/sqrt(fan_in), 1/sqrt(fan_in))."""
    k1, k2, k3, k4 = jax.random.split(key, 4)
    bound1 = 1.0 / jnp.sqrt(input_size)
    bound2 = 1.0 / jnp.sqrt(hidden_size)
    # Stored as (in_features, out_features) = transpose of PyTorch layout.
    w1 = jax.random.uniform(k1, (input_size, hidden_size), jnp.float32, -bound1, bound1)
    b1 = jax.random.uniform(k2, (1, hidden_size), jnp.float32, -bound1, bound1)
    w2 = jax.random.uniform(k3, (hidden_size, output_size), jnp.float32, -bound2, bound2)
    b2 = jax.random.uniform(k4, (1, output_size), jnp.float32, -bound2, bound2)
    return w1, b1, w2, b2


if __name__ == "__main__":
    input_size, hidden_size, output_size = 32, 64, 16
    batch = 8

    key = jax.random.PRNGKey(0)
    kx, kp = jax.random.split(key)
    x = jax.random.normal(kx, (batch, input_size), jnp.float32)
    w1, b1, w2, b2 = init_params(kp, input_size, hidden_size, output_size)

    out = shallow_mlp(x, w1, b1, w2, b2)
    out = jax.block_until_ready(out)

    # Reference in plain f32 JAX (same math as the PyTorch Sequential).
    # Tolerances loosened for the bf16 operands (f32 accumulation kept).
    ref = jnp.maximum(x @ w1 + b1, 0.0) @ w2 + b2
    assert out.shape == (batch, output_size)
    assert jnp.allclose(out, ref, atol=3e-2, rtol=3e-2)

    # Larger, non-divisible batch to exercise balanced tiling + padding
    # (300 -> two tiles of 160 rows, grid=(2,)).
    xb = jax.random.normal(kx, (300, input_size), jnp.float32)
    outb = jax.block_until_ready(shallow_mlp(xb, w1, b1, w2, b2))
    refb = jnp.maximum(xb @ w1 + b1, 0.0) @ w2 + b2
    assert outb.shape == (300, output_size)
    assert jnp.allclose(outb, refb, atol=3e-2, rtol=3e-2)

    print("KERNEL_OK")
</pallas_src>

<mosaic_0001>
module attributes {stable_mosaic.version = 11 : i64} {
  func.func @shallow_mlp_kernel(%arg0: i32, %arg1: memref<16x32xbf16, #tpu.memory_space<vmem>>, %arg2: memref<32x128xbf16, #tpu.memory_space<vmem>>, %arg3: memref<1x128xf32, #tpu.memory_space<vmem>>, %arg4: memref<128x16xbf16, #tpu.memory_space<vmem>>, %arg5: memref<1x16xf32, #tpu.memory_space<vmem>>, %arg6: memref<16x16xf32, #tpu.memory_space<vmem>>) attributes {dimension_semantics = [#tpu.dimension_semantics<parallel>], iteration_bounds = array<i64: 1>, scalar_prefetch = 0 : i64, scratch_operands = 0 : i64, tpu.core_type = #tpu.core_type<tc>, window_params = [{transform_indices = @transform_0, window_bounds = array<i64: 16, 32>}, {pipeline_mode = #tpu.pipeline_mode<synchronous>, transform_indices = @transform_1, window_bounds = array<i64: 32, 128>}, {pipeline_mode = #tpu.pipeline_mode<synchronous>, transform_indices = @transform_2, window_bounds = array<i64: 1, 128>}, {pipeline_mode = #tpu.pipeline_mode<synchronous>, transform_indices = @transform_3, window_bounds = array<i64: 128, 16>}, {pipeline_mode = #tpu.pipeline_mode<synchronous>, transform_indices = @transform_4, window_bounds = array<i64: 1, 16>}, {transform_indices = @transform_5, window_bounds = array<i64: 16, 16>}]} {
    %c0 = arith.constant 0 : index
    %c0_0 = arith.constant 0 : index
    %0 = vector.load %arg1[%c0, %c0_0] : memref<16x32xbf16, #tpu.memory_space<vmem>>, vector<16x32xbf16>
    %c0_1 = arith.constant 0 : index
    %c0_2 = arith.constant 0 : index
    %1 = vector.load %arg2[%c0_1, %c0_2] : memref<32x128xbf16, #tpu.memory_space<vmem>>, vector<32x128xbf16>
    %cst = arith.constant dense<0.000000e+00> : vector<16x128xf32>
    %2 = tpu.matmul %0, %1, %cst {dimension_numbers = #tpu.dot_dimension_numbers<[1], [0], [0], [1], [0, 0, 1, 1], [], []>} : vector<16x32xbf16>, vector<32x128xbf16>, vector<16x128xf32> -> vector<16x128xf32>
    %c0_3 = arith.constant 0 : index
    %c0_4 = arith.constant 0 : index
    %3 = vector.load %arg3[%c0_3, %c0_4] : memref<1x128xf32, #tpu.memory_space<vmem>>, vector<1x128xf32>
    %4 = vector.broadcast %3 : vector<1x128xf32> to vector<16x128xf32>
    %5 = arith.addf %2, %4 : vector<16x128xf32>
    %cst_5 = arith.constant 0.000000e+00 : f32
    %6 = vector.broadcast %cst_5 : f32 to vector<16x128xf32>
    %7 = arith.maximumf %5, %6 : vector<16x128xf32>
    %8 = arith.truncf %7 : vector<16x128xf32> to vector<16x128xbf16>
    %c0_6 = arith.constant 0 : index
    %c0_7 = arith.constant 0 : index
    %9 = vector.load %arg4[%c0_6, %c0_7] : memref<128x16xbf16, #tpu.memory_space<vmem>>, vector<128x16xbf16>
    %cst_8 = arith.constant dense<0.000000e+00> : vector<16x16xf32>
    %10 = tpu.matmul %8, %9, %cst_8 {dimension_numbers = #tpu.dot_dimension_numbers<[1], [0], [0], [1], [0, 0, 1, 1], [], []>} : vector<16x128xbf16>, vector<128x16xbf16>, vector<16x16xf32> -> vector<16x16xf32>
    %c0_9 = arith.constant 0 : index
    %c0_10 = arith.constant 0 : index
    %11 = vector.load %arg5[%c0_9, %c0_10] : memref<1x16xf32, #tpu.memory_space<vmem>>, vector<1x16xf32>
    %12 = vector.broadcast %11 : vector<1x16xf32> to vector<16x16xf32>
    %13 = arith.addf %10, %12 : vector<16x16xf32>
    %c0_11 = arith.constant 0 : index
    %c0_12 = arith.constant 0 : index
    %14 = vector.load %arg6[%c0_11, %c0_12] : memref<16x16xf32, #tpu.memory_space<vmem>>, vector<16x16xf32>
    tpu.vector_store %arg6[%c0_11, %c0_12], %13 {strides = array<i32>} : memref<16x16xf32, #tpu.memory_space<vmem>>, vector<16x16xf32>,
    return
  }
  func.func @transform_0(%arg0: i32) -> (i32, i32) {
    %c0_i32 = arith.constant 0 : i32
    %c0_i32_0 = arith.constant 0 : i32
    return %arg0, %c0_i32 : i32, i32
  }
  func.func @transform_1(%arg0: i32) -> (i32, i32) {
    %c0_i32 = arith.constant 0 : i32
    %c0_i32_0 = arith.constant 0 : i32
    %c0_i32_1 = arith.constant 0 : i32
    return %c0_i32, %c0_i32_0 : i32, i32
  }
  func.func @transform_2(%arg0: i32) -> (i32, i32) {
    %c0_i32 = arith.constant 0 : i32
    %c0_i32_0 = arith.constant 0 : i32
    %c0_i32_1 = arith.constant 0 : i32
    return %c0_i32, %c0_i32_0 : i32, i32
  }
  func.func @transform_3(%arg0: i32) -> (i32, i32) {
    %c0_i32 = arith.constant 0 : i32
    %c0_i32_0 = arith.constant 0 : i32
    %c0_i32_1 = arith.constant 0 : i32
    return %c0_i32, %c0_i32_0 : i32, i32
  }
  func.func @transform_4(%arg0: i32) -> (i32, i32) {
    %c0_i32 = arith.constant 0 : i32
    %c0_i32_0 = arith.constant 0 : i32
    %c0_i32_1 = arith.constant 0 : i32
    return %c0_i32, %c0_i32_0 : i32, i32
  }
  func.func @transform_5(%arg0: i32) -> (i32, i32) {
    %c0_i32 = arith.constant 0 : i32
    %c0_i32_0 = arith.constant 0 : i32
    return %arg0, %c0_i32 : i32, i32
  }
}

</mosaic_0001>

<bundles_post_ra>
// kernel: tpu_custom_call.1
= control target key start
LH: loop header
LB: loop body
LE: loop exit
PB: predicated region body
PF: predicated region fallthrough
CT: control target
= control target key end

     0   :  { %v325_v1 = vmov 0.0   ;;  %vm326_vm0 = vmmov 0   ;;  %vm52_vm1 = vcmask 261120   ;;  %s411_s0 = inlined_call_operand.vmem [shape: bf16[16,32], index: 0, kind: input, shape index: {}]   ;;  %s412_s1 = inlined_call_operand.vmem [shape: bf16[32,128], index: 1, kind: input, shape index: {}]   ;;  %s413_s2 = inlined_call_operand.vmem [shape: f32[1,128], index: 2, kind: input, shape index: {}]   ;;  %s414_s3 = inlined_call_operand.vmem [shape: bf16[128,16], index: 3, kind: input, shape index: {}]   ;;  %s415_s4 = inlined_call_operand.vmem [shape: f32[1,16], index: 4, kind: input, shape index: {}]   ;;  %s416_s5 = inlined_call_operand.hbm [shape: f32[16,16], index: 5, kind: output, shape index: {}]  }
   0x1   :  { %v290_v0 = vld [vmem:[%s412_s1] sm:$0xff]   ;;  %257 = vmatprep.subr.bf16.mxu0 %v325_v1  ;;  %265 = vmatprep.subr.bf16.mxu1 %v325_v1  ;;  %v291_v2 = vld [vmem:[%s412_s1 + $0x8] sm:$0xff]   ;;  %v295_v6 = vld [vmem:[%s414_s3 + $0x10] sm:$0xff]  }
   0x2   :  { %258 = vmatpush3.bf16.msra.mxu0 %v290_v0  ;;  %261 = vmatprep.mubr.msk.bf16.mxu0 %vm326_vm0, %v325_v1  ;;  %v293_v3 = vld [vmem:[%s414_s3] sm:$0xff]   ;;  %v294_v5 = vld [vmem:[%s414_s3 + $0x8] sm:$0xff]  }
   0x3   :  { %259 = vmatprep.subr.bf16.mxu0 %v325_v1  ;;  %281 = vmatprep.mubr.msk.bf16.mxu1 %vm326_vm0, %v325_v1  ;;  %v292_v4 = vld [vmem:[%s411_s0] sm:$0xff]  }
   0x4   :  { %266 = vmatpush3.bf16.msra.mxu1 %v293_v3 }
   0x5   :  { %267 = vmatprep.subr.bf16.mxu1 %v325_v1 }
   0x6   :  { %260 = vmatpush3.bf16.msra.mxu0 %v291_v2 }
   0x8   :  { %268 = vmatpush3.bf16.msra.mxu1 %v294_v5 }
   0x9   :  { %262 = vmatmul.mubr.msk.bf16.vlgmr.msra.gmra.mrb[0].mxu0 %vm52_vm1, %v292_v4  ;;  %269 = vmatprep.subr.bf16.mxu1 %v325_v1 }
   0xa   :  { %10 = vsyncpa [#allocation3], 0  ;;  %v296_v7 = vld [vmem:[%s414_s3 + $0x18] sm:$0xff]   ;;  %v297_v8 = vld [vmem:[%s414_s3 + $0x20] sm:$0xff]   ;;  %vm212_vm2 = vcmask 130048  }
   0xb   :  { %v298_v9 = vld [vmem:[%s414_s3 + $0x28] sm:$0xff]   ;;  %v299_v10 = vld [vmem:[%s414_s3 + $0x30] sm:$0xff]   ;;  %v300_v11 = vld [vmem:[%s414_s3 + $0x38] sm:$0xff]   ;;  %s327_s3 = smov [#allocation2]  }
   0xc   :  { %270 = vmatpush3.bf16.msra.mxu1 %v295_v6  ;;  %v231_v12 = vld [vmem:[%s413_s2] ss:$0 sm:$0xff]  ;;  %s220_s17 = sshll.u32 %s327_s3, 4  ;;  %s221_s17 = int_to_ptr.vmem [resolvable:$true] %s220_s17 }
   0xd   :  { %271 = vmatprep.subr.bf16.mxu1 %v325_v1  ;;  %v236_v22 = vld [vmem:[%s415_s4] ss:$0 sm:$0xff]  ;;  %s301_s2 = scalar_lea.vmem %s221_s17, 256  ;;  %p306_p1 = scmp.lt.s32.totalorder %s221_s17, %s221_s17 }
   0xe   :  { %p302_p0 = scmp.ne.s32.totalorder %s221_s17, %s301_s2  ;;  %p307_p2 = scmp.lt.s32.totalorder %s301_s2, %s301_s2 }
  0x10   :  { %272 = vmatpush3.bf16.msra.mxu1 %v296_v7  ;;  %p308_p3 = por %p307_p2, %p306_p1 }
  0x11   :  { %273 = vmatprep.subr.bf16.mxu1 %v325_v1 }
  0x12   :  { %p309_p4 = pnand %p308_p3, %p302_p0 }
  0x14   :  { %274 = vmatpush3.bf16.msra.mxu1 %v297_v8 }
  0x15   :  { %275 = vmatprep.subr.bf16.mxu1 %v325_v1 }
  0x18   :  { %276 = vmatpush3.bf16.msra.mxu1 %v298_v9 }
  0x19   :  { %277 = vmatprep.subr.bf16.mxu1 %v325_v1 }
  0x1c   :  { %278 = vmatpush3.bf16.msra.mxu1 %v299_v10 }
  0x1d   :  { %279 = vmatprep.subr.bf16.mxu1 %v325_v1 }
  0x20   :  { %280 = vmatpush3.bf16.msra.mxu1 %v300_v11 }
  0xdc   :  { %v90_v13 = vpop.f32.mrb[0].mxu0 }
  0xdd   :  { %v91_v14 = vadd.f32 %v231_v12, %v90_v13  ;;  %v263_v15 = vpop.f32.mrb[1].mxu0 }
  0xde   :  { %v93_v16 = vpop.f32.mrb[2].mxu0 }
  0xdf   :  { %v94_v17 = vadd.f32 %v231_v12, %v93_v16  ;;  %v264_v18 = vpop.f32.mrb[3].mxu0  ;;  %v97_v19 = vmax.f32 %v91_v14, 0.0 }
  0xe1   :  { %v98_v20 = vmax.f32 %v94_v17, 0.0 }
  0xe3   :  { %v99_v21 = vpack.c.bf16 %v98_v20, %v97_v19 }
  0xe5   :  { %282 = vmatmul.mubr.bf16.vlgmr.msra.gmra.mrb[0].mxu1 %v99_v21 }
 0x1b8   :  { %v205_v23 = vpop.f32.mrb[0].mxu1 }
 0x1b9   :  { %v206_v24 = vadd.f32 %v236_v22, %v205_v23  ;;  %v283_v25 = vpop.f32.mrb[1].mxu1 }
 0x1ba   :  { %v208_v26 = vpop.f32.mrb[2].mxu1 }
 0x1bb   :  { %213 = vst.msk [vmem:[#allocation2] sm:$0xff] %vm212_vm2, %v206_v24  ;;  %v209_v27 = vadd.f32 %v236_v22, %v208_v26  ;;  %v284_v28 = vpop.f32.mrb[3].mxu1 }
 0x1bd   :  { %214 = vst.msk [vmem:[#allocation2 + $0x8] sm:$0xff] %vm212_vm2, %v209_v27 }
 0x1be   :  { %312 = shalt.err (!%p309_p4)
}
 0x1bf   :  { %s313_s19 = scalar_lea.hbm %s416_s5, 256 }
 0x1c0   :  { %p314_p5 = scmp.ne.s32.totalorder %s416_s5, %s313_s19  ;;  %p317_p6 = scmp.lt.u32.totalorder %s313_s19, %s416_s5 }
 0x1c2   :  { %p319_p7 = pnand %p317_p6, %p314_p5 }
 0x1c4   :  { %322 = shalt.err (!%p319_p7)
}
 0x1c5   :  { %s328_s24 = smov 128   ;;  %s329_s25 = smov 8  }
 0x1c6   :  { %226 = dma.vmem_to_hbm [thread:$0]  %s221_s17, 256, %s416_s5, [#allocation3], %s328_s24, %s328_s24, %s329_s25  }
 0x1c7   :  { %323 = dma.done.wait [#allocation3], 256  }
 0x1c8   :  { %324 = vsyncadd [#allocation3], 4294967040 }
 0x1c9   :  { %230 = vsyncpa [#allocation3], 1 }

</bundles_post_ra>
